<compile_context>
chip_gen: v7x
topology: tpu7x:2x2x1
jax: 0.10.0
libtpu: 0.0.40
codegen_flags: <defaults>
</compile_context>

<pallas_src>
import jax
import jax.numpy as jnp
import numpy as np
from jax.experimental import pallas as pl
from jax.experimental.pallas import tpu as pltpu


def _round_up(x, m):
    return ((x + m - 1) // m) * m


# ---------------------------------------------------------------------------
# Kernel: two small encoder matmuls + ReLU, concat+fc fused as two partial
# matmuls.  All weights/biases are grid-resident (constant index_map); only the
# activations and the logits stream over the batch grid axis.
# ---------------------------------------------------------------------------
def joint_classifier_kernel(x_ts_ref, x_tab_ref,
                            w_ts_ref, b_ts_ref, w_tab_ref, b_tab_ref,
                            w_fc_ts_ref, w_fc_tab_ref, b_fc_ref,
                            out_ref):
    # enc_time: Linear + ReLU (f32 accumulation on the MXU)
    h_ts = jnp.dot(x_ts_ref[...], w_ts_ref[...],
                   preferred_element_type=jnp.float32)
    h_ts = jnp.maximum(h_ts + b_ts_ref[...], 0.0)

    # enc_tab: Linear + ReLU
    h_tab = jnp.dot(x_tab_ref[...], w_tab_ref[...],
                    preferred_element_type=jnp.float32)
    h_tab = jnp.maximum(h_tab + b_tab_ref[...], 0.0)

    # torch.cat([h_ts, h_tab], dim=1) @ W_fc + b_fc, without materializing the
    # concat: split W_fc on its input axis and sum the two partial products.
    logits = (jnp.dot(h_ts, w_fc_ts_ref[...], preferred_element_type=jnp.float32)
              + jnp.dot(h_tab, w_fc_tab_ref[...], preferred_element_type=jnp.float32)
              + b_fc_ref[...])
    out_ref[...] = logits.astype(out_ref.dtype)   # lane-dense 128-wide store


# ---------------------------------------------------------------------------
# One-time parameter packing ("module construction" time, not per call):
# only the fc weight/bias are zero-padded to 128 output lanes (unmasked vst).
# ---------------------------------------------------------------------------
def pack_params(w_ts, b_ts, w_tab, b_tab, w_fc_ts, w_fc_tab, b_fc,
                *, n_multiple=128):
    num_classes = b_fc.shape[-1]
    n_pad = _round_up(num_classes, n_multiple)
    d_ts, d_tab = w_fc_ts.shape[0], w_fc_tab.shape[0]

    w_fc_ts_p = jnp.zeros((d_ts, n_pad), jnp.float32).at[:, :num_classes].set(w_fc_ts)
    w_fc_tab_p = jnp.zeros((d_tab, n_pad), jnp.float32).at[:, :num_classes].set(w_fc_tab)
    b_fc_p = jnp.zeros((1, n_pad), jnp.float32).at[:, :num_classes].set(b_fc)

    return (jnp.asarray(w_ts, jnp.float32), jnp.asarray(b_ts, jnp.float32),
            jnp.asarray(w_tab, jnp.float32), jnp.asarray(b_tab, jnp.float32),
            w_fc_ts_p, w_fc_tab_p, b_fc_p)


# ---------------------------------------------------------------------------
# Wrapper: batch-only grid, weights pinned in VMEM, activations streamed as-is.
# Returns the PADDED (b_pad, 128) logits buffer; slice [:B, :num_classes]
# lazily at the consumer (avoids an extra full-output HBM pass here).
# ---------------------------------------------------------------------------
def joint_classifier(x_ts, x_tab, packed_params, *,
                     tile_b=1024, out_dtype=jnp.float32):
    w_ts, b_ts, w_tab, b_tab, w_fc_ts, w_fc_tab, b_fc = packed_params
    n_pad = b_fc.shape[-1]

    B = x_ts.shape[0]
    x_ts_flat = x_ts.reshape(B, -1)        # contiguous flatten(T, C): free
    k_ts = x_ts_flat.shape[1]
    k_tab = x_tab.shape[1]

    # Batch tiling (16-row quantum so bf16 outputs also tile cleanly):
    #  * big tiles amortize the ~0.35us/step pipeline overhead (mem-bound),
    #  * but large batches are split into >= ~8 steps so double-buffering can
    #    hide DMAs and v7x's two TensorCores both get work,
    #  * tile_b=1024 keeps the double-buffered working set ~1.4 MiB — well
    #    inside v5e's 16 MiB scoped VMEM default and v7x's 64 MiB physical.
    tile_b = max(16, _round_up(tile_b, 16))
    b_pad = _round_up(max(B, 16), 16)
    tb = min(tile_b, b_pad, max(256, _round_up(pl.cdiv(b_pad, 8), 16)))
    b_pad = _round_up(b_pad, tb)

    pad_b = b_pad - B
    if pad_b:
        x_ts_flat = jnp.pad(x_ts_flat, ((0, pad_b), (0, 0)))
        x_tab = jnp.pad(x_tab, ((0, pad_b), (0, 0)))

    grid = (b_pad // tb,)

    out = pl.pallas_call(
        joint_classifier_kernel,
        out_shape=jax.ShapeDtypeStruct((b_pad, n_pad), out_dtype),
        grid_spec=pl.GridSpec(
            grid=grid,
            in_specs=[
                # activations: stream over batch, feature dim = full array dim
                pl.BlockSpec((tb, k_ts), lambda i: (i, 0)),
                pl.BlockSpec((tb, k_tab), lambda i: (i, 0)),
                # weights / biases: resident across all grid steps
                pl.BlockSpec(w_ts.shape, lambda i: (0, 0)),
                pl.BlockSpec(b_ts.shape, lambda i: (0, 0)),
                pl.BlockSpec(w_tab.shape, lambda i: (0, 0)),
                pl.BlockSpec(b_tab.shape, lambda i: (0, 0)),
                pl.BlockSpec(w_fc_ts.shape, lambda i: (0, 0)),
                pl.BlockSpec(w_fc_tab.shape, lambda i: (0, 0)),
                pl.BlockSpec(b_fc.shape, lambda i: (0, 0)),
            ],
            out_specs=pl.BlockSpec((tb, n_pad), lambda i: (i, 0)),  # lane-dense
        ),
        compiler_params=pltpu.CompilerParams(
            # batch axis is independent -> both TensorCores on v7x
            dimension_semantics=("parallel",),
        ),
    )(x_ts_flat, x_tab, w_ts, b_ts, w_tab, b_tab, w_fc_ts, w_fc_tab, b_fc)

    return out   # (b_pad, n_pad); consumer slices [:B, :num_classes] lazily


# ---------------------------------------------------------------------------
# Pure-JAX reference matching the PyTorch forward semantics.
# ---------------------------------------------------------------------------
def reference(x_ts, x_tab, raw_params):
    w_ts, b_ts, w_tab, b_tab, w_fc_ts, w_fc_tab, b_fc = raw_params
    ts_out = jnp.maximum(x_ts.reshape(x_ts.shape[0], -1) @ w_ts + b_ts, 0.0)
    tab_out = jnp.maximum(x_tab @ w_tab + b_tab, 0.0)
    combined = jnp.concatenate([ts_out, tab_out], axis=1)    # torch.cat(dim=1)
    w_fc = jnp.concatenate([w_fc_ts, w_fc_tab], axis=0)
    return combined @ w_fc + b_fc


if __name__ == "__main__":
    # Small deterministic problem.
    B, T, C = 2, 8, 4          # time-series input (batch, seq, channels)
    F_TAB = 12                 # tabular features
    D_TS, D_TAB = 16, 16       # enc_time.output_dim, enc_tab.output_dim
    NUM_CLASSES = 5
    # TODO(synk): enc_time/enc_tab are arbitrary nn.Modules in the reference;
    # realized here as Linear+ReLU encoders (the shape-compatible canonical choice).

    key = jax.random.PRNGKey(0)
    ks = jax.random.split(key, 9)

    x_ts = jax.random.normal(ks[0], (B, T, C), dtype=jnp.float32)
    x_tab = jax.random.normal(ks[1], (B, F_TAB), dtype=jnp.float32)

    # Deterministic parameters (stored already transposed: (in, out)).
    w_ts = 0.1 * jax.random.normal(ks[2], (T * C, D_TS), dtype=jnp.float32)
    b_ts = 0.1 * jax.random.normal(ks[3], (1, D_TS), dtype=jnp.float32)
    w_tab = 0.1 * jax.random.normal(ks[4], (F_TAB, D_TAB), dtype=jnp.float32)
    b_tab = 0.1 * jax.random.normal(ks[5], (1, D_TAB), dtype=jnp.float32)
    w_fc_ts = 0.1 * jax.random.normal(ks[6], (D_TS, NUM_CLASSES), dtype=jnp.float32)
    w_fc_tab = 0.1 * jax.random.normal(ks[7], (D_TAB, NUM_CLASSES), dtype=jnp.float32)
    b_fc = 0.1 * jax.random.normal(ks[8], (1, NUM_CLASSES), dtype=jnp.float32)

    raw_params = (w_ts, b_ts, w_tab, b_tab, w_fc_ts, w_fc_tab, b_fc)
    ref = jax.block_until_ready(reference(x_ts, x_tab, raw_params))

    packed = pack_params(*raw_params)

    # f32 output path: must match the reference tightly.
    out_pad = jax.block_until_ready(joint_classifier(x_ts, x_tab, packed))
    out = out_pad[:B, :NUM_CLASSES]
    assert out.shape == (B, NUM_CLASSES)
    np.testing.assert_allclose(np.asarray(out), np.asarray(ref),
                               rtol=1e-5, atol=1e-5)

    # bf16 output path (halves the dominant HBM writeback stream); f32
    # accumulation inside the kernel, only the final store is bf16.
    out_bf16 = jax.block_until_ready(
        joint_classifier(x_ts, x_tab, packed, out_dtype=jnp.bfloat16))
    np.testing.assert_allclose(
        np.asarray(out_bf16[:B, :NUM_CLASSES]).astype(np.float32),
        np.asarray(ref), rtol=2e-2, atol=2e-2)

    print("KERNEL_OK")
</pallas_src>

<mosaic_0001>
module attributes {stable_mosaic.version = 11 : i64} {
  func.func @joint_classifier_kernel(%arg0: i32, %arg1: memref<16x32xf32, #tpu.memory_space<vmem>>, %arg2: memref<16x12xf32, #tpu.memory_space<vmem>>, %arg3: memref<32x16xf32, #tpu.memory_space<vmem>>, %arg4: memref<1x16xf32, #tpu.memory_space<vmem>>, %arg5: memref<12x16xf32, #tpu.memory_space<vmem>>, %arg6: memref<1x16xf32, #tpu.memory_space<vmem>>, %arg7: memref<16x128xf32, #tpu.memory_space<vmem>>, %arg8: memref<16x128xf32, #tpu.memory_space<vmem>>, %arg9: memref<1x128xf32, #tpu.memory_space<vmem>>, %arg10: memref<16x128xf32, #tpu.memory_space<vmem>>) attributes {dimension_semantics = [#tpu.dimension_semantics<parallel>], iteration_bounds = array<i64: 1>, scalar_prefetch = 0 : i64, scratch_operands = 0 : i64, tpu.core_type = #tpu.core_type<tc>, window_params = [{transform_indices = @transform_0, window_bounds = array<i64: 16, 32>}, {transform_indices = @transform_1, window_bounds = array<i64: 16, 12>}, {pipeline_mode = #tpu.pipeline_mode<synchronous>, transform_indices = @transform_2, window_bounds = array<i64: 32, 16>}, {pipeline_mode = #tpu.pipeline_mode<synchronous>, transform_indices = @transform_3, window_bounds = array<i64: 1, 16>}, {pipeline_mode = #tpu.pipeline_mode<synchronous>, transform_indices = @transform_4, window_bounds = array<i64: 12, 16>}, {pipeline_mode = #tpu.pipeline_mode<synchronous>, transform_indices = @transform_5, window_bounds = array<i64: 1, 16>}, {pipeline_mode = #tpu.pipeline_mode<synchronous>, transform_indices = @transform_6, window_bounds = array<i64: 16, 128>}, {pipeline_mode = #tpu.pipeline_mode<synchronous>, transform_indices = @transform_7, window_bounds = array<i64: 16, 128>}, {pipeline_mode = #tpu.pipeline_mode<synchronous>, transform_indices = @transform_8, window_bounds = array<i64: 1, 128>}, {transform_indices = @transform_9, window_bounds = array<i64: 16, 128>}]} {
    %c0 = arith.constant 0 : index
    %c0_0 = arith.constant 0 : index
    %0 = vector.load %arg1[%c0, %c0_0] : memref<16x32xf32, #tpu.memory_space<vmem>>, vector<16x32xf32>
    %c0_1 = arith.constant 0 : index
    %c0_2 = arith.constant 0 : index
    %1 = vector.load %arg3[%c0_1, %c0_2] : memref<32x16xf32, #tpu.memory_space<vmem>>, vector<32x16xf32>
    %cst = arith.constant dense<0.000000e+00> : vector<16x16xf32>
    %2 = tpu.matmul %0, %1, %cst {dimension_numbers = #tpu.dot_dimension_numbers<[1], [0], [0], [1], [0, 0, 1, 1], [], []>} : vector<16x32xf32>, vector<32x16xf32>, vector<16x16xf32> -> vector<16x16xf32>
    %c0_3 = arith.constant 0 : index
    %c0_4 = arith.constant 0 : index
    %3 = vector.load %arg4[%c0_3, %c0_4] : memref<1x16xf32, #tpu.memory_space<vmem>>, vector<1x16xf32>
    %4 = vector.broadcast %3 : vector<1x16xf32> to vector<16x16xf32>
    %5 = arith.addf %2, %4 : vector<16x16xf32>
    %cst_5 = arith.constant 0.000000e+00 : f32
    %6 = vector.broadcast %cst_5 : f32 to vector<16x16xf32>
    %7 = arith.maximumf %5, %6 : vector<16x16xf32>
    %c0_6 = arith.constant 0 : index
    %c0_7 = arith.constant 0 : index
    %8 = vector.load %arg2[%c0_6, %c0_7] : memref<16x12xf32, #tpu.memory_space<vmem>>, vector<16x12xf32>
    %c0_8 = arith.constant 0 : index
    %c0_9 = arith.constant 0 : index
    %9 = vector.load %arg5[%c0_8, %c0_9] : memref<12x16xf32, #tpu.memory_space<vmem>>, vector<12x16xf32>
    %cst_10 = arith.constant dense<0.000000e+00> : vector<16x16xf32>
    %10 = tpu.matmul %8, %9, %cst_10 {dimension_numbers = #tpu.dot_dimension_numbers<[1], [0], [0], [1], [0, 0, 1, 1], [], []>} : vector<16x12xf32>, vector<12x16xf32>, vector<16x16xf32> -> vector<16x16xf32>
    %c0_11 = arith.constant 0 : index
    %c0_12 = arith.constant 0 : index
    %11 = vector.load %arg6[%c0_11, %c0_12] : memref<1x16xf32, #tpu.memory_space<vmem>>, vector<1x16xf32>
    %12 = vector.broadcast %11 : vector<1x16xf32> to vector<16x16xf32>
    %13 = arith.addf %10, %12 : vector<16x16xf32>
    %cst_13 = arith.constant 0.000000e+00 : f32
    %14 = vector.broadcast %cst_13 : f32 to vector<16x16xf32>
    %15 = arith.maximumf %13, %14 : vector<16x16xf32>
    %c0_14 = arith.constant 0 : index
    %c0_15 = arith.constant 0 : index
    %16 = vector.load %arg7[%c0_14, %c0_15] : memref<16x128xf32, #tpu.memory_space<vmem>>, vector<16x128xf32>
    %cst_16 = arith.constant dense<0.000000e+00> : vector<16x128xf32>
    %17 = tpu.matmul %7, %16, %cst_16 {dimension_numbers = #tpu.dot_dimension_numbers<[1], [0], [0], [1], [0, 0, 1, 1], [], []>} : vector<16x16xf32>, vector<16x128xf32>, vector<16x128xf32> -> vector<16x128xf32>
    %c0_17 = arith.constant 0 : index
    %c0_18 = arith.constant 0 : index
    %18 = vector.load %arg8[%c0_17, %c0_18] : memref<16x128xf32, #tpu.memory_space<vmem>>, vector<16x128xf32>
    %cst_19 = arith.constant dense<0.000000e+00> : vector<16x128xf32>
    %19 = tpu.matmul %15, %18, %cst_19 {dimension_numbers = #tpu.dot_dimension_numbers<[1], [0], [0], [1], [0, 0, 1, 1], [], []>} : vector<16x16xf32>, vector<16x128xf32>, vector<16x128xf32> -> vector<16x128xf32>
    %20 = arith.addf %17, %19 : vector<16x128xf32>
    %c0_20 = arith.constant 0 : index
    %c0_21 = arith.constant 0 : index
    %21 = vector.load %arg9[%c0_20, %c0_21] : memref<1x128xf32, #tpu.memory_space<vmem>>, vector<1x128xf32>
    %22 = vector.broadcast %21 : vector<1x128xf32> to vector<16x128xf32>
    %23 = arith.addf %20, %22 : vector<16x128xf32>
    %c0_22 = arith.constant 0 : index
    %c0_23 = arith.constant 0 : index
    %24 = vector.load %arg10[%c0_22, %c0_23] : memref<16x128xf32, #tpu.memory_space<vmem>>, vector<16x128xf32>
    tpu.vector_store %arg10[%c0_22, %c0_23], %23 {strides = array<i32>} : memref<16x128xf32, #tpu.memory_space<vmem>>, vector<16x128xf32>,
    return
  }
  func.func @transform_0(%arg0: i32) -> (i32, i32) {
    %c0_i32 = arith.constant 0 : i32
    %c0_i32_0 = arith.constant 0 : i32
    return %arg0, %c0_i32 : i32, i32
  }
  func.func @transform_1(%arg0: i32) -> (i32, i32) {
    %c0_i32 = arith.constant 0 : i32
    %c0_i32_0 = arith.constant 0 : i32
    return %arg0, %c0_i32 : i32, i32
  }
  func.func @transform_2(%arg0: i32) -> (i32, i32) {
    %c0_i32 = arith.constant 0 : i32
    %c0_i32_0 = arith.constant 0 : i32
    %c0_i32_1 = arith.constant 0 : i32
    return %c0_i32, %c0_i32_0 : i32, i32
  }
  func.func @transform_3(%arg0: i32) -> (i32, i32) {
    %c0_i32 = arith.constant 0 : i32
    %c0_i32_0 = arith.constant 0 : i32
    %c0_i32_1 = arith.constant 0 : i32
    return %c0_i32, %c0_i32_0 : i32, i32
  }
  func.func @transform_4(%arg0: i32) -> (i32, i32) {
    %c0_i32 = arith.constant 0 : i32
    %c0_i32_0 = arith.constant 0 : i32
    %c0_i32_1 = arith.constant 0 : i32
    return %c0_i32, %c0_i32_0 : i32, i32
  }
  func.func @transform_5(%arg0: i32) -> (i32, i32) {
    %c0_i32 = arith.constant 0 : i32
    %c0_i32_0 = arith.constant 0 : i32
    %c0_i32_1 = arith.constant 0 : i32
    return %c0_i32, %c0_i32_0 : i32, i32
  }
  func.func @transform_6(%arg0: i32) -> (i32, i32) {
    %c0_i32 = arith.constant 0 : i32
    %c0_i32_0 = arith.constant 0 : i32
    %c0_i32_1 = arith.constant 0 : i32
    return %c0_i32, %c0_i32_0 : i32, i32
  }
  func.func @transform_7(%arg0: i32) -> (i32, i32) {
    %c0_i32 = arith.constant 0 : i32
    %c0_i32_0 = arith.constant 0 : i32
    %c0_i32_1 = arith.constant 0 : i32
    return %c0_i32, %c0_i32_0 : i32, i32
  }
  func.func @transform_8(%arg0: i32) -> (i32, i32) {
    %c0_i32 = arith.constant 0 : i32
    %c0_i32_0 = arith.constant 0 : i32
    %c0_i32_1 = arith.constant 0 : i32
    return %c0_i32, %c0_i32_0 : i32, i32
  }
  func.func @transform_9(%arg0: i32) -> (i32, i32) {
    %c0_i32 = arith.constant 0 : i32
    %c0_i32_0 = arith.constant 0 : i32
    return %arg0, %c0_i32 : i32, i32
  }
}

</mosaic_0001>

<bundles_post_ra>
// kernel: tpu_custom_call.1
= control target key start
LH: loop header
LB: loop body
LE: loop exit
PB: predicated region body
PF: predicated region fallthrough
CT: control target
= control target key end

     0   :  { %14 = vsyncpa [#allocation3], 0  ;;  %s719_s0 = inlined_call_operand.vmem [shape: f32[16,32], index: 0, kind: input, shape index: {}]   ;;  %s720_s1 = inlined_call_operand.vmem [shape: f32[16,12], index: 1, kind: input, shape index: {}]   ;;  %s721_s2 = inlined_call_operand.vmem [shape: f32[32,16], index: 2, kind: input, shape index: {}]   ;;  %s722_s3 = inlined_call_operand.vmem [shape: f32[1,16], index: 3, kind: input, shape index: {}]   ;;  %s723_s4 = inlined_call_operand.vmem [shape: f32[12,16], index: 4, kind: input, shape index: {}]   ;;  %s724_s5 = inlined_call_operand.vmem [shape: f32[1,16], index: 5, kind: input, shape index: {}]   ;;  %s725_s6 = inlined_call_operand.vmem [shape: f32[16,128], index: 6, kind: input, shape index: {}]   ;;  %s726_s7 = inlined_call_operand.hbm [shape: f32[16,128], index: 7, kind: input, shape index: {}]   ;;  %s727_s8 = inlined_call_operand.vmem [shape: f32[1,128], index: 8, kind: input, shape index: {}]   ;;  %s728_s9 = inlined_call_operand.hbm [shape: f32[16,128], index: 9, kind: output, shape index: {}]  }
   0x1   :  { %15 = vsyncpa [#allocation4], 0  ;;  %s577_s30 = smov [#allocation2]   ;;  %s529_s13 = scalar_lea.hbm %s726_s7, 256 }
   0x2   :  { %s35_s10 = sshll.u32 %s577_s30, 4  ;;  %p530_p0 = scmp.ne.s32.totalorder %s726_s7, %s529_s13  ;;  %s36_s10 = int_to_ptr.vmem [resolvable:$true] %s35_s10 }
   0x3   :  { %p533_p1 = scmp.lt.u32.totalorder %s529_s13, %s726_s7 }
   0x5   :  { %p535_p2 = pnand %p533_p1, %p530_p0 }
   0x7   :  { %538 = shalt.err (!%p535_p2)
}
   0x8   :  { %s539_s18 = scalar_lea.vmem %s36_s10, 256  ;;  %p544_p4 = scmp.lt.s32.totalorder %s36_s10, %s36_s10 }
   0x9   :  { %p540_p3 = scmp.ne.s32.totalorder %s36_s10, %s539_s18  ;;  %p545_p5 = scmp.lt.s32.totalorder %s539_s18, %s539_s18 }
   0xb   :  { %p546_p6 = por %p545_p5, %p544_p4 }
   0xd   :  { %p547_p7 = pnand %p546_p6, %p540_p3 }
   0xf   :  { %550 = shalt.err (!%p547_p7)
}
  0x10   :  { %s578_s19 = smov 128   ;;  %s579_s20 = smov 8  }
  0x11   :  { %41 = dma.hbm_to_vmem [thread:$0]  %s726_s7, 256, %s36_s10, [#allocation3], %s578_s19, %s578_s19, %s579_s20  }
  0x12   :  { %573 = dma.done.wait [#allocation3], 256  }
  0x13   :  { %574 = vsyncadd [#allocation3], 4294967040  ;;  %vm162_vm0 = vcmask 1043456   ;;  %vm580_vm1 = vmmov 1   ;;  %vm155_vm3 = vcmask 97280   ;;  %v146_v1 = vld [vmem:[%s723_s4] sm:$0xff] }
  0x14   :  { %vm647_vm2 = vmpackc.low %vm162_vm0, %vm580_vm1  ;;  %v147_v2 = vld [vmem:[%s723_s4 + $0x8] sm:$0xf]  ;;  %v49_v3 = vld [vmem:[%s721_s2] sm:$0xff]  ;;  %vm60_vm4 = vcmask 261120   ;;  %vm247_vm5 = vcmask 130048   ;;  %s581_s27 = smov [#allocation5]  }
  0x15   :  { %v508_v4 = vpack.c.bf16 %v147_v2, %v146_v1  ;;  %v50_v5 = vld [vmem:[%s721_s2 + $0x8] sm:$0xff]  ;;  %v144_v6 = vld [vmem:[%s720_s1] sm:$0xff]  ;;  %v51_v8 = vld [vmem:[%s721_s2 + $0x10] sm:$0xff]  ;;  %s426_s28 = sshll.u32 %s581_s27, 4  ;;  %s427_s28 = int_to_ptr.vmem [resolvable:$true] %s426_s28 }
  0x16   :  { %v500_v7 = vpack.c.bf16 %v50_v5, %v49_v3  ;;  %483 = vmatprep.mubr.msk.f32.mxu1 %vm155_vm3, %v144_v6  ;;  %v52_v9 = vld [vmem:[%s721_s2 + $0x18] sm:$0xff]  ;;  %v47_v10 = vld [vmem:[%s719_s0] sm:$0xff]  ;;  %v145_v12 = vld [vmem:[%s720_s1 + $0x8] sm:$0xff]  ;;  %p556_p9 = scmp.lt.s32.totalorder %s427_s28, %s427_s28 }
  0x17   :  { %510 = vmatprep.subr.msk.bf16.mxu1 %vm647_vm2, %v508_v4  ;;  %v504_v11 = vpack.c.bf16 %v52_v9, %v51_v8  ;;  %476 = vmatprep.mubr.msk.f32.mxu0 %vm60_vm4, %v47_v10  ;;  %v48_v13 = vld [vmem:[%s719_s0 + $0x8] sm:$0xff]  ;;  %v245_v14 = vld [vmem:[#allocation2] sm:$0xff] }
  0x18   :  { %513 = vmatpush3.bf16.msk.msra.mxu1 %vm647_vm2, %v508_v4  ;;  %501 = vmatprep.subr.bf16.mxu0 %v500_v7  ;;  %v246_v15 = vld [vmem:[#allocation2 + $0x8] sm:$0xff]  ;;  %v243_v17 = vld [vmem:[%s725_s6] sm:$0xff] }
  0x19   :  { %503 = vmatpush3.bf16.msra.mxu0 %v500_v7  ;;  %v514_v16 = vpack.c.bf16 %v246_v15, %v245_v14  ;;  %v244_v18 = vld [vmem:[%s725_s6 + $0x8] sm:$0xff]  ;;  %v441_v20 = vld [vmem:[%s724_s5] ss:$0 sm:$0xff] }
  0x1a   :  { %505 = vmatprep.subr.bf16.mxu0 %v504_v11  ;;  %v518_v19 = vpack.c.bf16 %v244_v18, %v243_v17  ;;  %v438_v26 = vld [vmem:[%s722_s3] ss:$0 sm:$0xff]  ;;  %s551_s3 = scalar_lea.vmem %s427_s28, 256 }
  0x1b   :  { %484 = vmatmul.mubr.msk.f32.vlgmr.msra.gmra.mrb[0].mxu1 %vm155_vm3, %v145_v12  ;;  %515 = vmatprep.subr.bf16.mxu1 %v514_v16  ;;  %v449_v34 = vld [vmem:[%s727_s8] ss:$0 sm:$0xff]  ;;  %p552_p8 = scmp.ne.s32.totalorder %s427_s28, %s551_s3  ;;  %p557_p10 = scmp.lt.s32.totalorder %s551_s3, %s551_s3 }
  0x1c   :  { %517 = vmatpush3.bf16.msra.mxu1 %v514_v16 }
  0x1d   :  { %507 = vmatpush3.bf16.msra.mxu0 %v504_v11  ;;  %519 = vmatprep.subr.bf16.mxu1 %v518_v19  ;;  %p558_p11 = por %p557_p10, %p556_p9 }
  0x1f   :  { %p559_p12 = pnand %p558_p11, %p552_p8 }
  0x20   :  { %477 = vmatmul.mubr.msk.f32.vlgmr.msra.gmra.mrb[0].mxu0 %vm60_vm4, %v48_v13 }
  0xee   :  { %v485_v21 = vpop.f32.mrb[0].mxu1 }
  0xef   :  { %v238_v22 = vadd.f32 %v485_v21, %v441_v20  ;;  %v232_v23 = vpop.f32.mrb[1].mxu1 }
  0xf0   :  { %v233_v24 = vadd.f32 %v441_v20, %v232_v23 }
  0xf1   :  { %v242_v27 = vmax.f32 %v238_v22, 0.0 }
  0xf2   :  { %v241_v25 = vmax.f32 %v233_v24, 0.0 }
  0xf3   :  { %v478_v28 = vpop.f32.mrb[0].mxu0 }
  0xf4   :  { %490 = vmatprep.mubr.msk.f32.mxu1 %vm247_vm5, %v241_v25  ;;  %v133_v29 = vpop.f32.mrb[1].mxu0  ;;  %v139_v31 = vadd.f32 %v478_v28, %v438_v26 }
  0xf5   :  { %491 = vmatmul.mubr.msk.f32.vlgmr.msra.gmra.mrb[2].mxu1 %vm247_vm5, %v242_v27  ;;  %v134_v30 = vadd.f32 %v438_v26, %v133_v29 }
  0xf6   :  { %521 = vmatpush3.bf16.msra.mxu1 %v518_v19  ;;  %v143_v33 = vmax.f32 %v139_v31, 0.0 }
  0xf7   :  { %v142_v32 = vmax.f32 %v134_v30, 0.0 }
  0xf9   :  { %497 = vmatprep.mubr.msk.f32.mxu1 %vm247_vm5, %v142_v32 }
  0xfd   :  { %498 = vmatmul.mubr.msk.f32.vlgmr.msra.gmra.mrb[2].mxu1 %vm247_vm5, %v143_v33 }
 0x1d0   :  { %v499_v35 = vpop.f32.mrb[2].mxu1 }
 0x1d1   :  { %v418_v36 = vadd.f32 %v499_v35, %v449_v34  ;;  %v401_v37 = vpop.f32.mrb[3].mxu1 }
 0x1d2   :  { %v417_v38 = vadd.f32 %v449_v34, %v401_v37 }
 0x1d3   :  { %420 = vst [vmem:[#allocation5 + $0x8] sm:$0xff] %v418_v36 }
 0x1d4   :  { %419 = vst [vmem:[#allocation5] sm:$0xff] %v417_v38 }
 0x1d5   :  { %562 = shalt.err (!%p559_p12)
}
 0x1d6   :  { %s563_s8 = scalar_lea.hbm %s728_s9, 256 }
 0x1d7   :  { %p564_p13 = scmp.ne.s32.totalorder %s728_s9, %s563_s8  ;;  %p567_p0 = scmp.lt.u32.totalorder %s563_s8, %s728_s9 }
 0x1d9   :  { %p569_p1 = pnand %p567_p0, %p564_p13 }
 0x1db   :  { %572 = shalt.err (!%p569_p1)
}
 0x1dc   :  { %432 = dma.vmem_to_hbm [thread:$0]  %s427_s28, 256, %s728_s9, [#allocation4], %s578_s19, %s578_s19, %s579_s20  }
 0x1dd   :  { %575 = dma.done.wait [#allocation4], 256  }
 0x1de   :  { %576 = vsyncadd [#allocation4], 4294967040 }
 0x1df   :  { %436 = vsyncpa [#allocation3], 1 }
 0x1e0   :  { %437 = vsyncpa [#allocation4], 1 }

</bundles_post_ra>
